<compile_context>
chip_gen: v6e
topology: v6e:2x2x1
jax: 0.10.0
libtpu: 0.0.40
codegen_flags: <defaults>
</compile_context>

<pallas_src>
import functools

import jax
import jax.numpy as jnp
from jax.experimental import pallas as pl
from jax.experimental.pallas import tpu as pltpu


# ----------------------------- Pallas kernel --------------------------------
def _p2p_kernel(x_ref, w1_ref, b1_ref, w2_ref, b2_ref, o_ref, h_ref, *, N, d):
    """One grid step: a block of batch elements, all N*(N-1) ordered pairs."""
    # Split first-layer weight: concat(x_i, x_j) @ W1 = x_i @ W1_top + x_j @ W1_bot
    w1_top = w1_ref[pl.ds(0, d), :]          # (d, d)
    w1_bot = w1_ref[pl.ds(d, d), :]          # (d, d)
    b1 = b1_ref[...].astype(jnp.float32)     # (1, d)
    w2 = w2_ref[...]                         # (d, d)
    b2 = b2_ref[...].astype(jnp.float32)     # (1, d)

    for bl in range(x_ref.shape[0]):         # static unroll over the batch block
        xb = x_ref[bl]                       # (N, d)
        a = jnp.dot(xb, w1_top, preferred_element_type=jnp.float32) + b1   # (N, d)
        c = jnp.dot(xb, w1_bot, preferred_element_type=jnp.float32)        # (N, d)
        for i in range(N):                   # static unroll over person i
            # row j of `h` is the hidden activation of ordered pair (i, j)
            h = jnp.maximum(c + a[i:i + 1, :], 0.0)   # (N, d)
            base = i * (N - 1)
            # drop the diagonal pair (i, i); all slicing below is static
            if i > 0:
                h_ref[pl.ds(base, i), :] = h[:i, :]                 # j = 0..i-1
            if i + 1 < N:
                h_ref[pl.ds(base + i, N - 1 - i), :] = h[i + 1:, :]  # j = i+1..N-1
        # single second-layer matmul over all N*(N-1) pairs of this batch element
        y = jnp.dot(h_ref[...], w2, preferred_element_type=jnp.float32) + b2
        o_ref[bl] = y.astype(o_ref.dtype)


def _pick_block_b(B):
    # Biggest small power-of-two batch block that still leaves >= 2 grid steps
    # (keeps both v7x TensorCores fed) while amortizing per-step overhead.
    for cand in (8, 4, 2):
        if B % cand == 0 and B // cand >= 2:
            return cand
    return 1


# ----------------------------- module wrapper --------------------------------
def init_params(key, d_model, dtype=jnp.float32):
    """Deterministic Xavier-uniform init for build_mlp(2d -> [d] -> d)."""
    k1, k2 = jax.random.split(key)

    def xavier(k, fan_in, fan_out):
        lim = (6.0 / (fan_in + fan_out)) ** 0.5
        return jax.random.uniform(k, (fan_in, fan_out), dtype, -lim, lim)

    w1 = xavier(k1, 2 * d_model, d_model)
    b1 = jnp.zeros((1, d_model), dtype)
    w2 = xavier(k2, d_model, d_model)
    b2 = jnp.zeros((1, d_model), dtype)
    return (w1, b1, w2, b2)


@functools.partial(jax.jit, static_argnames=("N",))
def person_to_person_interaction(x, params, *, N):
    """x: (B, N, d) -> (B, N*(N-1), d)."""
    w1, b1, w2, b2 = params
    B, n_, d = x.shape
    assert n_ == N and N >= 2
    P = N * (N - 1)
    block_b = _pick_block_b(B)
    grid = (B // block_b,)

    act_bytes = jnp.dtype(x.dtype).itemsize
    par_bytes = jnp.dtype(w1.dtype).itemsize
    flops = B * (4 * N * d * d + 2 * P * d * d)
    bytes_accessed = act_bytes * (x.size + B * P * d) + par_bytes * (
        w1.size + b1.size + w2.size + b2.size)

    return pl.pallas_call(
        functools.partial(_p2p_kernel, N=N, d=d),
        out_shape=jax.ShapeDtypeStruct((B, P, d), x.dtype),
        grid_spec=pltpu.PrefetchScalarGridSpec(
            num_scalar_prefetch=0,
            grid=grid,
            in_specs=[
                pl.BlockSpec((block_b, N, d), lambda g: (g, 0, 0)),  # x block
                pl.BlockSpec((2 * d, d), lambda g: (0, 0)),          # W1 (full)
                pl.BlockSpec((1, d), lambda g: (0, 0)),              # b1
                pl.BlockSpec((d, d), lambda g: (0, 0)),              # W2 (full)
                pl.BlockSpec((1, d), lambda g: (0, 0)),              # b2
            ],
            out_specs=pl.BlockSpec((block_b, P, d), lambda g: (g, 0, 0)),
            scratch_shapes=[pltpu.VMEM((P, d), jnp.float32)],
        ),
        compiler_params=pltpu.CompilerParams(
            dimension_semantics=("parallel",)),
        cost_estimate=pl.CostEstimate(
            flops=flops, transcendentals=0, bytes_accessed=bytes_accessed),
    )(x, w1, b1, w2, b2)


def _reference(x, params, N):
    """Plain-JAX reference of the same forward pass (sanity check)."""
    w1, b1, w2, b2 = params
    B, _, d = x.shape
    tem1 = jnp.broadcast_to(x[:, :, None, :], (B, N, N, d)).reshape(B, N * N, d)
    tem2 = jnp.broadcast_to(x[:, None, :, :], (B, N, N, d)).reshape(B, N * N, d)
    tem3 = jnp.concatenate([tem1, tem2], axis=-1)
    idx = jnp.asarray(
        [N * i + j for i in range(N) for j in range(N) if j != i], dtype=jnp.int32)
    inter = tem3[:, idx, :]
    h = jnp.maximum(inter @ w1 + b1, 0.0)
    return h @ w2 + b2


if __name__ == "__main__":
    # Module-consistent small shapes: (B, N, d_model); J is unused by this forward.
    B, N, J, d_model = 2, 4, 8, 128
    key = jax.random.PRNGKey(0)
    kx, kp = jax.random.split(key)
    x = jax.random.normal(kx, (B, N, d_model), jnp.float32)
    params = init_params(kp, d_model)

    # TODO(synk): build_mlp is not defined in the snippet; assumed the repo's
    # standard Linear(2d,d) -> ReLU -> Linear(d,d) with no dropout/norm.

    out = person_to_person_interaction(x, params, N=N)
    out = jax.block_until_ready(out)

    ref = _reference(x, params, N)
    assert out.shape == (B, N * (N - 1), d_model), out.shape
    assert jnp.allclose(out, ref, atol=1e-3, rtol=1e-3)
    print("KERNEL_OK")
</pallas_src>

<mosaic_0001>
module attributes {stable_mosaic.version = 11 : i64} {
  func.func @_p2p_kernel(%arg0: i32, %arg1: memref<1x4x128xf32, #tpu.memory_space<vmem>>, %arg2: memref<256x128xf32, #tpu.memory_space<vmem>>, %arg3: memref<1x128xf32, #tpu.memory_space<vmem>>, %arg4: memref<128x128xf32, #tpu.memory_space<vmem>>, %arg5: memref<1x128xf32, #tpu.memory_space<vmem>>, %arg6: memref<1x12x128xf32, #tpu.memory_space<vmem>>, %arg7: memref<12x128xf32, #tpu.memory_space<vmem>>) attributes {dimension_semantics = [#tpu.dimension_semantics<parallel>], iteration_bounds = array<i64: 2>, scalar_prefetch = 0 : i64, scratch_operands = 1 : i64, tpu.core_type = #tpu.core_type<tc>, window_params = [{transform_indices = @transform_0, window_bounds = array<i64: 1, 4, 128>}, {pipeline_mode = #tpu.pipeline_mode<synchronous>, transform_indices = @transform_1, window_bounds = array<i64: 256, 128>}, {pipeline_mode = #tpu.pipeline_mode<synchronous>, transform_indices = @transform_2, window_bounds = array<i64: 1, 128>}, {pipeline_mode = #tpu.pipeline_mode<synchronous>, transform_indices = @transform_3, window_bounds = array<i64: 128, 128>}, {pipeline_mode = #tpu.pipeline_mode<synchronous>, transform_indices = @transform_4, window_bounds = array<i64: 1, 128>}, {transform_indices = @transform_5, window_bounds = array<i64: 1, 12, 128>}]} {
    %c0 = arith.constant 0 : index
    %c0_0 = arith.constant 0 : index
    %0 = vector.load %arg2[%c0, %c0_0] : memref<256x128xf32, #tpu.memory_space<vmem>>, vector<128x128xf32>
    %c128 = arith.constant 128 : index
    %c0_1 = arith.constant 0 : index
    %1 = vector.load %arg2[%c128, %c0_1] : memref<256x128xf32, #tpu.memory_space<vmem>>, vector<128x128xf32>
    %c0_2 = arith.constant 0 : index
    %c0_3 = arith.constant 0 : index
    %2 = vector.load %arg3[%c0_2, %c0_3] : memref<1x128xf32, #tpu.memory_space<vmem>>, vector<1x128xf32>
    %c0_4 = arith.constant 0 : index
    %c0_5 = arith.constant 0 : index
    %3 = vector.load %arg4[%c0_4, %c0_5] : memref<128x128xf32, #tpu.memory_space<vmem>>, vector<128x128xf32>
    %c0_6 = arith.constant 0 : index
    %c0_7 = arith.constant 0 : index
    %4 = vector.load %arg5[%c0_6, %c0_7] : memref<1x128xf32, #tpu.memory_space<vmem>>, vector<1x128xf32>
    %c0_8 = arith.constant 0 : index
    %c0_9 = arith.constant 0 : index
    %c0_10 = arith.constant 0 : index
    %5 = vector.load %arg1[%c0_8, %c0_9, %c0_10] : memref<1x4x128xf32, #tpu.memory_space<vmem>>, vector<1x4x128xf32>
    %6 = vector.shape_cast %5 : vector<1x4x128xf32> to vector<4x128xf32>
    %cst = arith.constant dense<0.000000e+00> : vector<4x128xf32>
    %7 = tpu.matmul %6, %0, %cst {dimension_numbers = #tpu.dot_dimension_numbers<[1], [0], [0], [1], [0, 0, 1, 1], [], []>} : vector<4x128xf32>, vector<128x128xf32>, vector<4x128xf32> -> vector<4x128xf32>
    %8 = vector.broadcast %2 : vector<1x128xf32> to vector<4x128xf32>
    %9 = arith.addf %7, %8 : vector<4x128xf32>
    %cst_11 = arith.constant dense<0.000000e+00> : vector<4x128xf32>
    %10 = tpu.matmul %6, %1, %cst_11 {dimension_numbers = #tpu.dot_dimension_numbers<[1], [0], [0], [1], [0, 0, 1, 1], [], []>} : vector<4x128xf32>, vector<128x128xf32>, vector<4x128xf32> -> vector<4x128xf32>
    %11 = vector.extract_strided_slice %9 {offsets = [0, 0], sizes = [1, 128], strides = [1, 1]} : vector<4x128xf32> to vector<1x128xf32>
    %12 = vector.broadcast %11 : vector<1x128xf32> to vector<4x128xf32>
    %13 = arith.addf %10, %12 : vector<4x128xf32>
    %cst_12 = arith.constant 0.000000e+00 : f32
    %14 = vector.broadcast %cst_12 : f32 to vector<4x128xf32>
    %15 = arith.maximumf %13, %14 : vector<4x128xf32>
    %16 = vector.extract_strided_slice %15 {offsets = [1, 0], sizes = [3, 128], strides = [1, 1]} : vector<4x128xf32> to vector<3x128xf32>
    %c0_13 = arith.constant 0 : index
    %c0_14 = arith.constant 0 : index
    %17 = vector.load %arg7[%c0_13, %c0_14] : memref<12x128xf32, #tpu.memory_space<vmem>>, vector<3x128xf32>
    tpu.vector_store %arg7[%c0_13, %c0_14], %16 {strides = array<i32>} : memref<12x128xf32, #tpu.memory_space<vmem>>, vector<3x128xf32>,
    %18 = vector.extract_strided_slice %9 {offsets = [1, 0], sizes = [1, 128], strides = [1, 1]} : vector<4x128xf32> to vector<1x128xf32>
    %19 = vector.broadcast %18 : vector<1x128xf32> to vector<4x128xf32>
    %20 = arith.addf %10, %19 : vector<4x128xf32>
    %cst_15 = arith.constant 0.000000e+00 : f32
    %21 = vector.broadcast %cst_15 : f32 to vector<4x128xf32>
    %22 = arith.maximumf %20, %21 : vector<4x128xf32>
    %23 = vector.extract_strided_slice %22 {offsets = [0, 0], sizes = [1, 128], strides = [1, 1]} : vector<4x128xf32> to vector<1x128xf32>
    %c3 = arith.constant 3 : index
    %c0_16 = arith.constant 0 : index
    %24 = vector.load %arg7[%c3, %c0_16] : memref<12x128xf32, #tpu.memory_space<vmem>>, vector<1x128xf32>
    tpu.vector_store %arg7[%c3, %c0_16], %23 {strides = array<i32>} : memref<12x128xf32, #tpu.memory_space<vmem>>, vector<1x128xf32>,
    %25 = vector.extract_strided_slice %22 {offsets = [2, 0], sizes = [2, 128], strides = [1, 1]} : vector<4x128xf32> to vector<2x128xf32>
    %c4 = arith.constant 4 : index
    %c0_17 = arith.constant 0 : index
    %26 = vector.load %arg7[%c4, %c0_17] : memref<12x128xf32, #tpu.memory_space<vmem>>, vector<2x128xf32>
    tpu.vector_store %arg7[%c4, %c0_17], %25 {strides = array<i32>} : memref<12x128xf32, #tpu.memory_space<vmem>>, vector<2x128xf32>,
    %27 = vector.extract_strided_slice %9 {offsets = [2, 0], sizes = [1, 128], strides = [1, 1]} : vector<4x128xf32> to vector<1x128xf32>
    %28 = vector.broadcast %27 : vector<1x128xf32> to vector<4x128xf32>
    %29 = arith.addf %10, %28 : vector<4x128xf32>
    %cst_18 = arith.constant 0.000000e+00 : f32
    %30 = vector.broadcast %cst_18 : f32 to vector<4x128xf32>
    %31 = arith.maximumf %29, %30 : vector<4x128xf32>
    %32 = vector.extract_strided_slice %31 {offsets = [0, 0], sizes = [2, 128], strides = [1, 1]} : vector<4x128xf32> to vector<2x128xf32>
    %c6 = arith.constant 6 : index
    %c0_19 = arith.constant 0 : index
    %33 = vector.load %arg7[%c6, %c0_19] : memref<12x128xf32, #tpu.memory_space<vmem>>, vector<2x128xf32>
    tpu.vector_store %arg7[%c6, %c0_19], %32 {strides = array<i32>} : memref<12x128xf32, #tpu.memory_space<vmem>>, vector<2x128xf32>,
    %34 = vector.extract_strided_slice %31 {offsets = [3, 0], sizes = [1, 128], strides = [1, 1]} : vector<4x128xf32> to vector<1x128xf32>
    %c8 = arith.constant 8 : index
    %c0_20 = arith.constant 0 : index
    %35 = vector.load %arg7[%c8, %c0_20] : memref<12x128xf32, #tpu.memory_space<vmem>>, vector<1x128xf32>
    tpu.vector_store %arg7[%c8, %c0_20], %34 {strides = array<i32>} : memref<12x128xf32, #tpu.memory_space<vmem>>, vector<1x128xf32>,
    %36 = vector.extract_strided_slice %9 {offsets = [3, 0], sizes = [1, 128], strides = [1, 1]} : vector<4x128xf32> to vector<1x128xf32>
    %37 = vector.broadcast %36 : vector<1x128xf32> to vector<4x128xf32>
    %38 = arith.addf %10, %37 : vector<4x128xf32>
    %cst_21 = arith.constant 0.000000e+00 : f32
    %39 = vector.broadcast %cst_21 : f32 to vector<4x128xf32>
    %40 = arith.maximumf %38, %39 : vector<4x128xf32>
    %41 = vector.extract_strided_slice %40 {offsets = [0, 0], sizes = [3, 128], strides = [1, 1]} : vector<4x128xf32> to vector<3x128xf32>
    %c9 = arith.constant 9 : index
    %c0_22 = arith.constant 0 : index
    %42 = vector.load %arg7[%c9, %c0_22] : memref<12x128xf32, #tpu.memory_space<vmem>>, vector<3x128xf32>
    tpu.vector_store %arg7[%c9, %c0_22], %41 {strides = array<i32>} : memref<12x128xf32, #tpu.memory_space<vmem>>, vector<3x128xf32>,
    %c0_23 = arith.constant 0 : index
    %c0_24 = arith.constant 0 : index
    %43 = vector.load %arg7[%c0_23, %c0_24] : memref<12x128xf32, #tpu.memory_space<vmem>>, vector<12x128xf32>
    %cst_25 = arith.constant dense<0.000000e+00> : vector<12x128xf32>
    %44 = tpu.matmul %43, %3, %cst_25 {dimension_numbers = #tpu.dot_dimension_numbers<[1], [0], [0], [1], [0, 0, 1, 1], [], []>} : vector<12x128xf32>, vector<128x128xf32>, vector<12x128xf32> -> vector<12x128xf32>
    %45 = vector.broadcast %4 : vector<1x128xf32> to vector<12x128xf32>
    %46 = arith.addf %44, %45 : vector<12x128xf32>
    %c0_26 = arith.constant 0 : index
    %c0_27 = arith.constant 0 : index
    %c0_28 = arith.constant 0 : index
    %47 = vector.load %arg6[%c0_26, %c0_27, %c0_28] : memref<1x12x128xf32, #tpu.memory_space<vmem>>, vector<1x12x128xf32>
    %48 = vector.shape_cast %47 : vector<1x12x128xf32> to vector<12x128xf32>
    %49 = vector.shape_cast %46 : vector<12x128xf32> to vector<1x12x128xf32>
    tpu.vector_store %arg6[%c0_26, %c0_27, %c0_28], %49 {strides = array<i32>} : memref<1x12x128xf32, #tpu.memory_space<vmem>>, vector<1x12x128xf32>,
    return
  }
  func.func @transform_0(%arg0: i32) -> (i32, i32, i32) {
    %c0_i32 = arith.constant 0 : i32
    %c0_i32_0 = arith.constant 0 : i32
    %c0_i32_1 = arith.constant 0 : i32
    return %arg0, %c0_i32, %c0_i32_0 : i32, i32, i32
  }
  func.func @transform_1(%arg0: i32) -> (i32, i32) {
    %c0_i32 = arith.constant 0 : i32
    %c0_i32_0 = arith.constant 0 : i32
    %c0_i32_1 = arith.constant 0 : i32
    return %c0_i32, %c0_i32_0 : i32, i32
  }
  func.func @transform_2(%arg0: i32) -> (i32, i32) {
    %c0_i32 = arith.constant 0 : i32
    %c0_i32_0 = arith.constant 0 : i32
    %c0_i32_1 = arith.constant 0 : i32
    return %c0_i32, %c0_i32_0 : i32, i32
  }
  func.func @transform_3(%arg0: i32) -> (i32, i32) {
    %c0_i32 = arith.constant 0 : i32
    %c0_i32_0 = arith.constant 0 : i32
    %c0_i32_1 = arith.constant 0 : i32
    return %c0_i32, %c0_i32_0 : i32, i32
  }
  func.func @transform_4(%arg0: i32) -> (i32, i32) {
    %c0_i32 = arith.constant 0 : i32
    %c0_i32_0 = arith.constant 0 : i32
    %c0_i32_1 = arith.constant 0 : i32
    return %c0_i32, %c0_i32_0 : i32, i32
  }
  func.func @transform_5(%arg0: i32) -> (i32, i32, i32) {
    %c0_i32 = arith.constant 0 : i32
    %c0_i32_0 = arith.constant 0 : i32
    %c0_i32_1 = arith.constant 0 : i32
    return %arg0, %c0_i32, %c0_i32_0 : i32, i32, i32
  }
}

</mosaic_0001>

<bundles_post_ra>
// kernel: person_to_person_interaction.1
= control target key start
LH: loop header
LB: loop body
LE: loop exit
PB: predicated region body
PF: predicated region fallthrough
CT: control target
= control target key end

     0   :  { %10 = vsyncpa [#allocation4], 0  ;;  %s1238_s0 = inlined_call_operand.hbm [shape: f32[2,4,128], index: 0, kind: input, shape index: {}]   ;;  %s1239_s1 = inlined_call_operand.hbm [shape: f32[256,128], index: 1, kind: input, shape index: {}]   ;;  %s1240_s2 = inlined_call_operand.vmem [shape: f32[1,128], index: 2, kind: input, shape index: {}]   ;;  %s1241_s3 = inlined_call_operand.hbm [shape: f32[128,128], index: 3, kind: input, shape index: {}]   ;;  %s1242_s4 = inlined_call_operand.vmem [shape: f32[1,128], index: 4, kind: input, shape index: {}]   ;;  %s1243_s5 = inlined_call_operand.vmem [shape: f32[2,12,128], index: 5, kind: output, shape index: {}]  }
   0x1   :  { %12 = vsyncpa [#allocation4 + $0x1], 0 }
   0x2   :  { %13 = vsyncpa [#allocation6], 0  ;;  %s1065_s18 = smov 0   ;;  %s1067_s19 = smov 0  }
   0x3   :  { %s1069_s20 = smov 0   ;;  %s1071_s21 = smov 0  }
   0x4 LB: > { %s1084_s22 = sadd.s32 4294967295, %s1026_s21   ;;  %p39_p0 = scmp.ne.s32.totalorder %s1018_s19, %s1014_s18  ;;  %s1026_s21 = sphi %s1071_s21, %s1258_s21   ;;  %s1022_s20 = sphi %s1069_s20, %s1257_s20   ;;  %s1018_s19 = sphi %s1067_s19, %s1256_s19   ;;  %s1014_s18 = sphi %s1065_s18, %s1255_s18  }
   0x5   : > { %p1244_p1 = scmp.eq.s32.totalorder %s1084_s22, 0  ;;  %p670_p2 = scmp.ge.s32.totalorder %s1026_s21, 1 }
   0x6   : > { %p160_p3 = scmp.lt.s32.totalorder %s1026_s21, 3  ;;  %s1028_s25 = smov [#allocation5]  }
   0x7   : > { %p1092_p4 = por %p1244_p1, %p39_p0  ;;  %s172_s26 = sshll.u32 %s1028_s25, 4  ;;  %s173_s26 = int_to_ptr.vmem [resolvable:$true] %s172_s26 }
   0x8   : > { %p1096_p5 = pnand %p670_p2, %p160_p3  ;;  %s1029_s28 = smov [#allocation7]  }
   0x9   : > { %s1247_s23 = scalar_select %p1092_p4, 1, 0 }
   0xa   : > { %s1248_s24 = scalar_select %p1096_p5, 1, 0 }
   0xb   : > { %p854_p6 = pneg %p1096_p5  ;;  %s188_s29 = sshll.u32 %s1029_s28, 4  ;;  %s189_s29 = int_to_ptr.vmem [resolvable:$true] %s188_s29 }
   0xc   : > { %s919_s30 = scalar_lea.vmem %s173_s26, 4096  ;;  %p927_p12 = scmp.lt.s32.totalorder %s173_s26, %s173_s26 }
   0xd   : > { %p1104_p7 = pnand %p854_p6, %p1244_p1  ;;  %p920_p9 = scmp.ne.s32.totalorder %s173_s26, %s919_s30 }
   0xe   : > { %p928_p13 = scmp.lt.s32.totalorder %s919_s30, %s919_s30 }
   0xf   : > { %p910_p8 = pneg %p1104_p7 }
  0x10   : > { %p929_p0 = por %p928_p13, %p927_p12 }
  0x11   : > { %p922_p10 = pnand %p920_p9, %p910_p8 }
  0x13   : > { %p923_p11 = pneg %p922_p10 }
  0x15   : > { %p930_p2 = pnand %p929_p0, %p923_p11 }
  0x17   : > { %933 = shalt.err (!%p930_p2)
}
  0x18   : > { %s1030_s6 = smov 128   ;;  %s1031_s7 = smov 8  }
  0x19   : > { %857 = dma.hbm_to_vmem [thread:$0]  (!%p1104_p7), %s1239_s1, 4096, %s173_s26, [#allocation6], %s1030_s6, %s1030_s6, %s1031_s7  }
  0x1a   : > { %s945_s10 = scalar_lea.vmem %s189_s29, 2048  ;;  %p953_p10 = scmp.lt.s32.totalorder %s189_s29, %s189_s29 }
  0x1b   : > { %p946_p3 = scmp.ne.s32.totalorder %s189_s29, %s945_s10  ;;  %p954_p1 = scmp.lt.s32.totalorder %s945_s10, %s945_s10 }
  0x1d   : > { %p948_p6 = pnand %p946_p3, %p910_p8  ;;  %p955_p12 = por %p954_p1, %p953_p10 }
  0x1f   : > { %p949_p9 = pneg %p948_p6 }
  0x21   : > { %p956_p11 = pnand %p955_p12, %p949_p9 }
  0x23   : > { %959 = shalt.err (!%p956_p11)
}
  0x24   : > { %860 = dma.hbm_to_vmem [thread:$0]  (!%p1104_p7), %s1241_s3, 2048, %s189_s29, [#allocation6], %s1030_s6, %s1030_s6, %s1031_s7  }
  0x25   : > { %s1127_s13 = sadd.s32 1, %s1026_s21   ;;  %s26_s14 = sadd.s32 1, %s1022_s20 }
  0x26   : > { %s23_s15 = ssub.s32 %s1026_s21, %s1127_s13  ;;  %p33_p1 = scmp.ne.s32.totalorder %s1022_s20, %s1018_s19 }
  0x27   : > { %p24_p8 = scmp.eq.s32.totalorder %s23_s15, 0  ;;  %p34_p13 = scmp.eq.s32.totalorder %s1026_s21, 0 }
  0x28   : > { %p867_p0 = scmp.lt.s32.totalorder %s1026_s21, 2  ;;  %s205_s16 = sand.u32 1, %s1022_s20  }
  0x29   : > { %s1138_s17 = scalar_select %p24_p8, %s1022_s20, %s26_s14  }
  0x2a   : > { %p35_p2 = por %p34_p13, %p33_p1  ;;  %s674_s18 = sshll.u32 %s205_s16, 2 }
  0x2b   : > { %s675_s25 = sshll.u32 %s1026_s21, 6  ;;  %s209_s29 = scalar_lea.vmem [#allocation3], %s674_s18 }
  0x2c   : > { %s1144_s28 = scalar_lea.hbm %s1238_s0, %s675_s25  ;;  %s216_s30 = sshll.u32 %s209_s29, 4  ;;  %s217_s30 = int_to_ptr.vmem [resolvable:$true] %s216_s30 }
  0x2d   : > { %p1146_p7 = pnand %p867_p0, %p35_p2  ;;  %s206_s7 = scalar_lea.sflag [#allocation4], %s205_s16 }
  0x2e   : > { %s960_s8 = scalar_lea.hbm %s1144_s28, 64  ;;  %s965_s10 = scalar_lea.hbm %s1238_s0, 128 }
  0x2f   : > { %p961_p3 = scmp.ne.s32.totalorder %s1144_s28, %s960_s8  ;;  %p962_p6 = pneg %p1146_p7 }
  0x30   : > { %p966_p12 = scmp.lt.s32.totalorder %s1144_s28, %s1238_s0  ;;  %p967_p11 = scmp.lt.s32.totalorder %s965_s10, %s960_s8 }
  0x31   : > { %p963_p9 = pnand %p962_p6, %p961_p3 }
  0x32   : > { %p968_p1 = por %p967_p11, %p966_p12 }
  0x33   : > { %p964_p10 = pneg %p963_p9 }
  0x35   : > { %p969_p8 = pnand %p968_p1, %p964_p10 }
  0x37   : > { %972 = shalt.err (!%p969_p8)
}
  0x38   : > { %s973_s14 = scalar_lea.vmem %s217_s30, 64  ;;  %s1032_s15 = smov [#allocation3]  }
  0x39   : > { %p974_p13 = scmp.ne.s32.totalorder %s217_s30, %s973_s14  ;;  %s978_s16 = sshll.u32 %s1032_s15, 4  ;;  %s979_s16 = int_to_ptr.vmem [resolvable:$false] %s978_s16 }
  0x3a   : > { %s980_s18 = scalar_lea.vmem %s979_s16, 128  ;;  %p981_p3 = scmp.lt.s32.totalorder %s217_s30, %s979_s16 }
  0x3b   : > { %p976_p0 = pnand %p974_p13, %p962_p6  ;;  %p982_p9 = scmp.lt.s32.totalorder %s980_s18, %s973_s14 }
  0x3d   : > { %p977_p2 = pneg %p976_p0  ;;  %p983_p4 = por %p982_p9, %p981_p3 }
  0x3f   : > { %p984_p5 = pnand %p983_p4, %p977_p2 }
  0x41   : > { %987 = shalt.err (!%p984_p5)
}
  0x42   : > { %864 = dma.hbm_to_vmem [thread:$0]  (!%p1146_p7), %s1144_s28, 64, %s217_s30, %s206_s7  }
  0x43   : > { %p1251_p10 = scmp.ne.s32.totalorder %s1248_s24, 0 }
  0x44   : > { %s227_s25 = sand.u32 (!%p1251_p10), 1, %s1018_s19   ;;  %p1252_p6 = scmp.ne.s32.totalorder (!%p1251_p10), %s1247_s23, 0 }
  0x45   : > { %225 = sbr.rel (%p1251_p10) target bundleno = 521 (0x209), region = 40  ;;  %s1167_s26 = sshll.u32 (!%p1251_p10), %s227_s25, 2 }
  0x46   : > { %s228_s27 = scalar_lea.sflag (!%p1251_p10), [#allocation4], %s227_s25  ;;  %s231_s29 = scalar_lea.vmem (!%p1251_p10), [#allocation3], %s1167_s26 }
  0x4a   : > { %1005 = dma.done.wait (%p1252_p6), %s228_s27, 64  }
  0x4b   : > { %1007 = vsyncadd (%p1252_p6), %s228_s27, 4294967232  ;;  %p1253_p4 = scmp.eq.s32.totalorder %s1084_s22, 0 }
  0x4d   : > { %1009 = dma.done.wait (%p1253_p4), [#allocation6], 6144   ;;  %p1254_p5 = pmov %p1253_p4 }
  0x4e   : > { %v1033_v0 = vmov 0.0   ;;  %vm1034_vm0 = vmmov 0   ;;  %v286_v1 = vld [vmem:[#allocation5 + $0x78] sm:$0xff]  ;;  %v285_v2 = vld [vmem:[#allocation5 + $0x70] sm:$0xff]  ;;  %v284_v5 = vld [vmem:[#allocation5 + $0x68] sm:$0xff]  ;;  %v468_v50 = vlaneseq  ;;  %p266_p7 = scmp.lt.s32.totalorder %s1084_s22, 1 }
  0x4f   : > { %1011 = vsyncadd (%p1254_p5), [#allocation6], 4294961152  ;;  %739 = vmatprep.subr.mxu0 %v1033_v0  ;;  %774 = vmatprep.subr.mxu1 %v1033_v0  ;;  %v302_v3 = vld [vmem:[#allocation5 + $0xf8] sm:$0xff]  ;;  %v301_v4 = vld [vmem:[#allocation5 + $0xf0] sm:$0xff] }
  0x50   : > { %771 = vmatprep.mubr.msk.f32.mxu0 %vm1034_vm0, %v1033_v0  ;;  %806 = vmatprep.mubr.msk.f32.mxu1 %vm1034_vm0, %v1033_v0  ;;  %v300_v6 = vld [vmem:[#allocation5 + $0xe8] sm:$0xff]  ;;  %v283_v7 = vld [vmem:[#allocation5 + $0x60] sm:$0xff]  ;;  %v282_v9 = vld [vmem:[#allocation5 + $0x58] sm:$0xff]  ;;  %v469_v51 = vshrl.u32 %v468_v50, 7  ;;  %s1260_s22 = smov (!%p266_p7, %s1084_s22), 1 }
  0x51   : > { %740 = vmatpush3.msra.mxu0 %v286_v1  ;;  %775 = vmatpush3.msra.mxu1 %v302_v3  ;;  %v299_v8 = vld [vmem:[#allocation5 + $0xe0] sm:$0xff]  ;;  %v298_v10 = vld [vmem:[#allocation5 + $0xd8] sm:$0xff]  ;;  %v281_v11 = vld [vmem:[#allocation5 + $0x50] sm:$0xff]  ;;  %s686_s28 = sshll.u32 %s1260_s22, 4 }
  0x52   : > { %741 = vmatprep.subr.mxu0 %v1033_v0  ;;  %776 = vmatprep.subr.mxu1 %v1033_v0  ;;  %v297_v12 = vld [vmem:[#allocation5 + $0xd0] sm:$0xff]  ;;  %v280_v13 = vld [vmem:[#allocation5 + $0x48] sm:$0xff]  ;;  %v279_v15 = vld [vmem:[#allocation5 + $0x40] sm:$0xff]  ;;  %v470_v53 = vsub.s32 0, %v469_v51  ;;  %v477_v54 = vsub.s32 1, %v469_v51  ;;  %v485_v55 = vsub.s32 2, %v469_v51  ;;  %s270_s21 = scalar_lea.vmem %s1243_s5, %s686_s28 }
  0x53   : > { %742 = vmatpush3.msra.mxu0 %v285_v2  ;;  %777 = vmatpush3.msra.mxu1 %v301_v4  ;;  %v296_v14 = vld [vmem:[#allocation5 + $0xc8] sm:$0xff]  ;;  %v295_v16 = vld [vmem:[#allocation5 + $0xc0] sm:$0xff]  ;;  %v278_v17 = vld [vmem:[#allocation5 + $0x38] sm:$0xff]  ;;  %v493_v56 = vsub.s32 3, %v469_v51 }
  0x54   : > { %743 = vmatprep.subr.mxu0 %v1033_v0  ;;  %778 = vmatprep.subr.mxu1 %v1033_v0  ;;  %v294_v18 = vld [vmem:[#allocation5 + $0xb8] sm:$0xff]  ;;  %v277_v19 = vld [vmem:[#allocation5 + $0x30] sm:$0xff]  ;;  %v276_v21 = vld [vmem:[#allocation5 + $0x28] sm:$0xff] }
  0x55   : > { %744 = vmatpush3.msra.mxu0 %v284_v5  ;;  %779 = vmatpush3.msra.mxu1 %v300_v6  ;;  %v293_v20 = vld [vmem:[#allocation5 + $0xb0] sm:$0xff]  ;;  %v292_v22 = vld [vmem:[#allocation5 + $0xa8] sm:$0xff]  ;;  %v275_v23 = vld [vmem:[#allocation5 + $0x20] sm:$0xff] }
  0x56   : > { %745 = vmatprep.subr.mxu0 %v1033_v0  ;;  %780 = vmatprep.subr.mxu1 %v1033_v0  ;;  %v291_v24 = vld [vmem:[#allocation5 + $0xa0] sm:$0xff]  ;;  %v274_v25 = vld [vmem:[#allocation5 + $0x18] sm:$0xff]  ;;  %v273_v27 = vld [vmem:[#allocation5 + $0x10] sm:$0xff] }
  0x57   : > { %746 = vmatpush3.msra.mxu0 %v283_v7  ;;  %781 = vmatpush3.msra.mxu1 %v299_v8  ;;  %v290_v26 = vld [vmem:[#allocation5 + $0x98] sm:$0xff]  ;;  %v289_v28 = vld [vmem:[#allocation5 + $0x90] sm:$0xff]  ;;  %v272_v29 = vld [vmem:[#allocation5 + $0x8] sm:$0xff] }
  0x58   : > { %747 = vmatprep.subr.mxu0 %v1033_v0  ;;  %782 = vmatprep.subr.mxu1 %v1033_v0  ;;  %v288_v30 = vld [vmem:[#allocation5 + $0x88] sm:$0xff]  ;;  %v271_v31 = vld [vmem:[#allocation5] sm:$0xff]  ;;  %v321_v33 = vld [vmem:[%s231_s29] sm:$0xf] }
  0x59   : > { %748 = vmatpush3.msra.mxu0 %v282_v9  ;;  %783 = vmatpush3.msra.mxu1 %v298_v10  ;;  %v287_v32 = vld [vmem:[#allocation5 + $0x80] sm:$0xff]  ;;  %v319_v34 = vld [vmem:[#allocation7 + $0x78] sm:$0xff]  ;;  %v318_v35 = vld [vmem:[#allocation7 + $0x70] sm:$0xff] }
  0x5a   : > { %749 = vmatprep.subr.mxu0 %v1033_v0  ;;  %784 = vmatprep.subr.mxu1 %v1033_v0  ;;  %v317_v36 = vld [vmem:[#allocation7 + $0x68] sm:$0xff]  ;;  %v316_v37 = vld [vmem:[#allocation7 + $0x60] sm:$0xff]  ;;  %v315_v38 = vld [vmem:[#allocation7 + $0x58] sm:$0xff] }
  0x5b   : > { %750 = vmatpush3.msra.mxu0 %v281_v11  ;;  %785 = vmatpush3.msra.mxu1 %v297_v12  ;;  %v314_v39 = vld [vmem:[#allocation7 + $0x50] sm:$0xff]  ;;  %v313_v40 = vld [vmem:[#allocation7 + $0x48] sm:$0xff]  ;;  %v312_v41 = vld [vmem:[#allocation7 + $0x40] sm:$0xff] }
  0x5c   : > { %751 = vmatprep.subr.mxu0 %v1033_v0  ;;  %786 = vmatprep.subr.mxu1 %v1033_v0  ;;  %v311_v42 = vld [vmem:[#allocation7 + $0x38] sm:$0xff]  ;;  %v310_v43 = vld [vmem:[#allocation7 + $0x30] sm:$0xff]  ;;  %v309_v44 = vld [vmem:[#allocation7 + $0x28] sm:$0xff] }
  0x5d   : > { %752 = vmatpush3.msra.mxu0 %v280_v13  ;;  %787 = vmatpush3.msra.mxu1 %v296_v14  ;;  %v308_v45 = vld [vmem:[#allocation7 + $0x20] sm:$0xff]  ;;  %v307_v46 = vld [vmem:[#allocation7 + $0x18] sm:$0xff]  ;;  %v306_v47 = vld [vmem:[#allocation7 + $0x10] sm:$0xff] }
  0x5e   : > { %753 = vmatprep.subr.mxu0 %v1033_v0  ;;  %788 = vmatprep.subr.mxu1 %v1033_v0  ;;  %v305_v48 = vld [vmem:[#allocation7 + $0x8] sm:$0xff]  ;;  %v304_v49 = vld [vmem:[#allocation7] sm:$0xff] }
  0x5f   : > { %754 = vmatpush3.msra.mxu0 %v279_v15  ;;  %789 = vmatpush3.msra.mxu1 %v295_v16  ;;  %v682_v52 = vld [vmem:[%s1240_s2] ss:$0 sm:$0xff] }
  0x60   : > { %755 = vmatprep.subr.mxu0 %v1033_v0  ;;  %790 = vmatprep.subr.mxu1 %v1033_v0  ;;  %v683_v12 = vld [vmem:[%s1242_s4] ss:$0 sm:$0xff] }
  0x61   : > { %756 = vmatpush3.msra.mxu0 %v278_v17  ;;  %791 = vmatpush3.msra.mxu1 %v294_v18 }
  0x62   : > { %757 = vmatprep.subr.mxu0 %v1033_v0  ;;  %792 = vmatprep.subr.mxu1 %v1033_v0 }
  0x63   : > { %758 = vmatpush3.msra.mxu0 %v277_v19  ;;  %793 = vmatpush3.msra.mxu1 %v293_v20 }
  0x64   : > { %759 = vmatprep.subr.mxu0 %v1033_v0  ;;  %794 = vmatprep.subr.mxu1 %v1033_v0 }
  0x65   : > { %760 = vmatpush3.msra.mxu0 %v276_v21  ;;  %795 = vmatpush3.msra.mxu1 %v292_v22 }
  0x66   : > { %761 = vmatprep.subr.mxu0 %v1033_v0  ;;  %796 = vmatprep.subr.mxu1 %v1033_v0 }
  0x67   : > { %762 = vmatpush3.msra.mxu0 %v275_v23  ;;  %797 = vmatpush3.msra.mxu1 %v291_v24 }
  0x68   : > { %763 = vmatprep.subr.mxu0 %v1033_v0  ;;  %798 = vmatprep.subr.mxu1 %v1033_v0 }
  0x69   : > { %764 = vmatpush3.msra.mxu0 %v274_v25  ;;  %799 = vmatpush3.msra.mxu1 %v290_v26 }
  0x6a   : > { %765 = vmatprep.subr.mxu0 %v1033_v0  ;;  %800 = vmatprep.subr.mxu1 %v1033_v0 }
  0x6b   : > { %766 = vmatpush3.msra.mxu0 %v273_v27  ;;  %801 = vmatpush3.msra.mxu1 %v289_v28 }
  0x6c   : > { %767 = vmatprep.subr.mxu0 %v1033_v0  ;;  %802 = vmatprep.subr.mxu1 %v1033_v0 }
  0x6d   : > { %768 = vmatpush3.msra.mxu0 %v272_v29  ;;  %803 = vmatpush3.msra.mxu1 %v288_v30 }
  0x6e   : > { %769 = vmatprep.subr.mxu0 %v1033_v0  ;;  %804 = vmatprep.subr.mxu1 %v1033_v0 }
  0x6f   : > { %770 = vmatpush3.msra.mxu0 %v271_v31  ;;  %805 = vmatpush3.msra.mxu1 %v287_v32 }
  0x70   : > { %772 = vmatmul.mubr.f32.vlgmr.msra.gmra.mxu0 %v321_v33  ;;  %807 = vmatmul.mubr.f32.vlgmr.msra.gmra.mxu1 %v321_v33 }
  0x71   : > { %809 = vmatprep.subr.mxu0 %v319_v34 }
  0x72   : > { %810 = vmatpush3.msra.mxu0 %v319_v34 }
  0x73   : > { %811 = vmatprep.subr.mxu0 %v318_v35 }
  0x74   : > { %812 = vmatpush3.msra.mxu0 %v318_v35 }
  0x75   : > { %813 = vmatprep.subr.mxu0 %v317_v36 }
  0x76   : > { %814 = vmatpush3.msra.mxu0 %v317_v36 }
  0x77   : > { %815 = vmatprep.subr.mxu0 %v316_v37 }
  0x78   : > { %816 = vmatpush3.msra.mxu0 %v316_v37 }
  0x79   : > { %817 = vmatprep.subr.mxu0 %v315_v38 }
  0x7a   : > { %818 = vmatpush3.msra.mxu0 %v315_v38 }
  0x7b   : > { %819 = vmatprep.subr.mxu0 %v314_v39 }
  0x7c   : > { %820 = vmatpush3.msra.mxu0 %v314_v39 }
  0x7d   : > { %821 = vmatprep.subr.mxu0 %v313_v40 }
  0x7e   : > { %822 = vmatpush3.msra.mxu0 %v313_v40 }
  0x7f   : > { %823 = vmatprep.subr.mxu0 %v312_v41 }
  0x80   : > { %824 = vmatpush3.msra.mxu0 %v312_v41 }
  0x81   : > { %825 = vmatprep.subr.mxu0 %v311_v42 }
  0x82   : > { %826 = vmatpush3.msra.mxu0 %v311_v42 }
  0x83   : > { %827 = vmatprep.subr.mxu0 %v310_v43 }
  0x84   : > { %828 = vmatpush3.msra.mxu0 %v310_v43 }
  0x85   : > { %829 = vmatprep.subr.mxu0 %v309_v44 }
  0x86   : > { %830 = vmatpush3.msra.mxu0 %v309_v44 }
  0x87   : > { %831 = vmatprep.subr.mxu0 %v308_v45 }
  0x88   : > { %832 = vmatpush3.msra.mxu0 %v308_v45 }
  0x89   : > { %833 = vmatprep.subr.mxu0 %v307_v46 }
  0x8a   : > { %834 = vmatpush3.msra.mxu0 %v307_v46 }
  0x8b   : > { %835 = vmatprep.subr.mxu0 %v306_v47 }
  0x8c   : > { %836 = vmatpush3.msra.mxu0 %v306_v47 }
  0x8d   : > { %837 = vmatprep.subr.mxu0 %v305_v48 }
  0x8e   : > { %838 = vmatpush3.msra.mxu0 %v305_v48 }
  0x8f   : > { %839 = vmatprep.subr.mxu0 %v304_v49 }
  0x90   : > { %840 = vmatpush3.msra.mxu0 %v304_v49 }
 0x130   : > { %v394_v57 = vpop.f32.mrf.mxu0  ;;  %v464_v58 = vpop.f32.mrf.mxu1 }
 0x131   : > { %v395_v59 = vadd.f32 %v682_v52, %v394_v57 }
 0x132   : > { %v773_v60 = vpop.f32.mrf.mxu0  ;;  %v808_v61 = vpop.f32.mrf.mxu1 }
 0x133   : > { %v471_v62 = vrot.slane %v395_v59, %v470_v53  ;;  %v478_v63 = vrot.slane %v395_v59, %v477_v54  ;;  %v486_v0 = vrot.slane %v395_v59, %v485_v55  ;;  %v494_v1 = vrot.slane %v395_v59, %v493_v56 }
 0x135   : > { %v472_v2 = vadd.f32 %v471_v62, %v464_v58  ;;  %v479_v3 = vadd.f32 %v478_v63, %v464_v58  ;;  %v487_v4 = vadd.f32 %v486_v0, %v464_v58  ;;  %v495_v5 = vadd.f32 %v494_v1, %v464_v58 }
 0x137   : > { %v473_v6 = vmax.f32 %v472_v2, 0.0  ;;  %v480_v7 = vmax.f32 %v479_v3, 0.0  ;;  %v488_v8 = vmax.f32 %v487_v4, 0.0  ;;  %v496_v9 = vmax.f32 %v495_v5, 0.0 }
 0x139   : > { %474 = vst [vmem:[#allocation2 - $0x1] sm:$0xe] %v473_v6  ;;  %481 = vst [vmem:[#allocation2 + $0x3] sm:$0x1] %v480_v7 }
 0x13a   : > { %482 = vst [vmem:[#allocation2 + $0x2] sm:$0xc] %v480_v7  ;;  %489 = vst [vmem:[#allocation2 + $0x6] sm:$0x3] %v488_v8 }
 0x13b   : > { %490 = vst [vmem:[#allocation2 + $0x5] sm:$0x8] %v488_v8  ;;  %497 = vst [vmem:[#allocation2 + $0x9] sm:$0x7] %v496_v9 }
 0x141   : > { %v498_v10 = vld [vmem:[#allocation2] sm:$0xff] }
 0x142   : > { %v499_v11 = vld [vmem:[#allocation2 + $0x8] sm:$0xf]  ;;  %841 = vmatprep.mubr.f32.mxu0 %v498_v10 }
 0x143   : > { %842 = vmatmul.mubr.f32.vlgmr.msra.gmra.mxu0 %v499_v11 }
 0x203   : > { %v843_v13 = vpop.f32.mrf.mxu0 }
 0x204   : > { %v578_v14 = vadd.f32 %v843_v13, %v683_v12 }
 0x205   : > { %v572_v15 = vpop.f32.mrf.mxu0 }
 0x206   : > { %582 = vst [vmem:[%s270_s21 + $0x8] sm:$0xf] %v578_v14  ;;  %v573_v16 = vadd.f32 %v683_v12, %v572_v15 }
 0x208   : > { %581 = vst [vmem:[%s270_s21] sm:$0xff] %v573_v16 }
 0x209 PF: > { %p16_p12 = scmp.ge.s32.totalorder %s1127_s13, 4   ;;  %s1255_s18 = smov %s1018_s19 }
 0x20a   : > { %s1256_s19 = smov %s1022_s20  ;;  %s1257_s20 = smov %s1138_s17 }
 0x20b   : > { %s1258_s21 = smov %s1127_s13  ;;  %18 = sbr.rel (!%p16_p12) target bundleno = 4 (0x4), region = 88 }
 0x210   :  { %604 = vsyncpa [#allocation4], 1 }
 0x211   :  { %606 = vsyncpa [#allocation4 + $0x1], 1 }
 0x212   :  { %607 = vsyncpa [#allocation6], 1 }

</bundles_post_ra>
